<compile_context>
chip_gen: v5e
topology: v5e:2x2
jax: 0.10.0
libtpu: 0.0.40
codegen_flags: <defaults>
</compile_context>

<pallas_src>
import numpy as np
import jax
import jax.numpy as jnp
from jax.experimental import pallas as pl
from jax.experimental.pallas import tpu as pltpu

POOL_K = 3                      # nn.MaxPool1d kernel_size
POOL_S = 5                      # nn.MaxPool1d stride
_STRIDE2 = POOL_S * POOL_S      # fused two-level pool stride = 25
# Fused two-level pool taps: pooled2[..., j] = max_d x[..., 25*j + d], d in _TAPS.
_TAPS = tuple(a * POOL_S + b for a in range(POOL_K) for b in range(POOL_K))
# = (0, 1, 2, 5, 6, 7, 10, 11, 12)


def _head_kernel(x_ref, wr_ref, bf_ref, out_ref, acc_ref):
    """One (batch-block, seq-block) grid step of the fused pool+pool+fc1∘fc2 head.

    x_ref  : (BT, ST, H)       activation block (GPT last hidden state)
    wr_ref : (ST, L2, C)       fused fc1∘fc2 weight block (no lane padding in HBM)
    bf_ref : (1, C)   f32      fused bias
    out_ref: (BT, C)  f32      logits block (written on the last seq step only)
    acc_ref: (BT, C)  f32      VMEM accumulator, resident across the seq grid axis
    """
    s_idx = pl.program_id(1)

    @pl.when(s_idx == 0)
    def _init():
        acc_ref[...] = jnp.zeros_like(acc_ref)

    BT, ST, H = x_ref.shape
    L2 = wr_ref.shape[1]

    # --- fused MaxPool1d(3,5) ∘ MaxPool1d(3,5) ---------------------------------
    # 9 whole-width shifted taps + 8 elementwise maxima (VPU); no narrow lane
    # slices, no cross-lane reduces, no concatenates.  Afterwards
    #   m[..., 25*j] == pooled2[..., j]   for every valid j.
    W = H - _TAPS[-1]
    assert _STRIDE2 * (L2 - 1) < W          # all pooled positions are covered
    x = x_ref[...]                          # (BT, ST, H); block sized to fit vregs
    m = x[:, :, 0:W]
    for d in _TAPS[1:]:
        m = jnp.maximum(m, x[:, :, d:d + W])

    # --- contraction over this seq block (no flatten) --------------------------
    #   logits += Σ_j pooled2[:, s_blk, j] @ Wr[s_blk, j, :]
    acc = acc_ref[...]
    for j in range(L2):
        p2_j = m[:, :, _STRIDE2 * j].astype(wr_ref.dtype)          # (BT, ST)
        acc += jnp.dot(p2_j, wr_ref[:, j, :],
                       preferred_element_type=jnp.float32)          # (BT, C)
    acc_ref[...] = acc

    @pl.when(s_idx == pl.num_programs(1) - 1)
    def _finalize():
        out_ref[...] = (acc_ref[...] + bf_ref[...]).astype(out_ref.dtype)


def prepare_classifier_head(w1, b1, w2, b2, seq_len, gpt_hidden, *,
                            param_dtype=jnp.float32):
    """One-time parameter preparation (hoisted OUT of the per-call forward).

    * Algebraically fuses fc2(fc1(x)) = x @ (w1.T @ w2.T) + (b1 @ w2.T + b2).
      Valid ONLY because the PyTorch module applies NO nonlinearity / dropout
      between fc1 and fc2 — revisit if the module ever changes.
    * Reshapes the fused weight to (S, L2, C) so the kernel contracts block-by-block
      over the sequence axis with no in-kernel flatten.
    * No lane padding of the class dim in HBM (keeps weight bytes minimal).
    * `param_dtype=jnp.bfloat16` gives the v6e/v7x MXU-native path (bias stays f32).

    Weights are in PyTorch (out_features, in_features) layout:
      w1: (hidden, S*L2), b1: (hidden,), w2: (C, hidden), b2: (C,)
    """
    L1 = (gpt_hidden - POOL_K) // POOL_S + 1
    L2 = (L1 - POOL_K) // POOL_S + 1
    # Guard the fused 9-tap index formula (holds by floor arithmetic; assert anyway).
    assert _STRIDE2 * (L2 - 1) + _TAPS[-1] < gpt_hidden
    hidden, flat_in = w1.shape
    num_classes = w2.shape[0]
    assert flat_in == seq_len * L2 and w2.shape[1] == hidden

    hi = jax.lax.Precision.HIGHEST
    w_fused = jnp.dot(w1.T, w2.T, precision=hi)          # (S*L2, C)
    b_fused = jnp.dot(b1, w2.T, precision=hi) + b2       # (C,)
    wr = w_fused.reshape(seq_len, L2, num_classes).astype(param_dtype)
    bf = b_fused.reshape(1, num_classes).astype(jnp.float32)
    return wr, bf


def classifier_head_forward(gpt_out, wr, bf, *, block_b=8, block_s=8,
                            vmem_limit_bytes=32 * 1024 * 1024):
    """Pallas classifier head forward using pre-prepared (wr, bf) from
    `prepare_classifier_head`.  gpt_out: (B, S, H) in f32 (v5e) or bf16 (v6e/v7x)."""
    B, S, H = gpt_out.shape
    S_w, L2, C = wr.shape
    assert S_w == S and S % block_s == 0

    # Pad the batch (matmul M) dim to a full sublane multiple so output stores are
    # not sub-sublane masked and the MXU M dim is better filled.
    B_pad = ((B + block_b - 1) // block_b) * block_b
    if B_pad != B:
        gpt_out = jnp.pad(gpt_out, ((0, B_pad - B), (0, 0), (0, 0)))

    grid = (B_pad // block_b, S // block_s)    # (parallel batch, arbitrary contraction)

    out = pl.pallas_call(
        _head_kernel,
        out_shape=jax.ShapeDtypeStruct((B_pad, C), jnp.float32),
        grid_spec=pltpu.PrefetchScalarGridSpec(
            num_scalar_prefetch=0,
            grid=grid,
            in_specs=[
                pl.BlockSpec((block_b, block_s, H), lambda b, s: (b, s, 0)),
                pl.BlockSpec((block_s, L2, C), lambda b, s: (s, 0, 0)),
                pl.BlockSpec((1, C), lambda b, s: (0, 0)),
            ],
            out_specs=pl.BlockSpec((block_b, C), lambda b, s: (b, 0)),
            scratch_shapes=[pltpu.VMEM((block_b, C), jnp.float32)],
        ),
        compiler_params=pltpu.CompilerParams(
            dimension_semantics=("parallel", "arbitrary"),
            vmem_limit_bytes=vmem_limit_bytes,
        ),
    )(gpt_out, wr, bf)
    return out[:B]


def ref_forward(gpt_out, w1, b1, w2, b2):
    """Pure-JAX faithful reference of the PyTorch forward (after the GPT backbone)."""
    hi = jax.lax.Precision.HIGHEST

    def maxpool_last(v):
        L = v.shape[-1]
        lout = (L - POOL_K) // POOL_S + 1
        return jnp.stack(
            [jnp.max(v[..., j * POOL_S: j * POOL_S + POOL_K], axis=-1)
             for j in range(lout)], axis=-1)

    p1 = maxpool_last(gpt_out)
    p2 = maxpool_last(p1)
    concat = p2.reshape(gpt_out.shape[0], -1)
    f1 = jnp.dot(concat, w1.T, precision=hi) + b1
    return jnp.dot(f1, w2.T, precision=hi) + b2


if __name__ == "__main__":
    key = jax.random.PRNGKey(0)
    B, S = 2, 16                 # batch, max_seq_len (small; S=16 -> 2 contraction steps)
    GPT_HIDDEN = 128             # synthetic GPT hidden width
    HIDDEN_SIZE = 32             # classifier hidden_size
    NUM_CLASSES = 4
    VOCAB = 64

    k1, k2, k3, k4, k5 = jax.random.split(key, 5)

    # ---- deterministic stand-in for GPT2Model's last hidden state ----
    # TODO(synk): full GPT-2 transformer stack not implemented in Pallas.
    tok_emb = 0.02 * jax.random.normal(k1, (VOCAB, GPT_HIDDEN), jnp.float32)
    pos_emb = 0.02 * jax.random.normal(k2, (S, GPT_HIDDEN), jnp.float32)
    x_in = jax.random.randint(k3, (B, S), 0, VOCAB)          # token ids
    gpt_out = tok_emb[x_in] + pos_emb[None, :, :]            # (B, S, GPT_HIDDEN) f32

    # ---- classifier-head parameters (PyTorch (out_features, in_features) layout) ----
    L1 = (GPT_HIDDEN - POOL_K) // POOL_S + 1                 # 26
    L2 = (L1 - POOL_K) // POOL_S + 1                         # 5
    FLAT = S * L2                                            # fc1 in_features = 80
    w1 = jax.random.normal(k4, (HIDDEN_SIZE, FLAT), jnp.float32) / np.sqrt(FLAT)
    b1 = jnp.linspace(-0.1, 0.1, HIDDEN_SIZE, dtype=jnp.float32)
    w2 = jax.random.normal(k5, (NUM_CLASSES, HIDDEN_SIZE), jnp.float32) / np.sqrt(HIDDEN_SIZE)
    b2 = jnp.linspace(-0.05, 0.05, NUM_CLASSES, dtype=jnp.float32)

    ref = ref_forward(gpt_out, w1, b1, w2, b2)

    # ---- one-time weight prep (hoisted out of the forward path) ----
    wr_f32, bf_f32 = prepare_classifier_head(w1, b1, w2, b2, S, GPT_HIDDEN)
    wr_f32, bf_f32 = jax.block_until_ready((wr_f32, bf_f32))

    # f32 activation / f32 matmul path (v5e-friendly default).
    out = classifier_head_forward(gpt_out, wr_f32, bf_f32, block_b=8, block_s=8)
    out = jax.block_until_ready(out)
    assert out.shape == (B, NUM_CLASSES)
    assert np.allclose(np.asarray(out), np.asarray(ref), rtol=2e-3, atol=2e-3)

    # bf16 activations + bf16 fused weight (v6e/v7x path): pool in bf16 (max is exact),
    # bf16 MXU matmul with f32 accumulation.
    wr_bf16, bf_bf16 = prepare_classifier_head(
        w1, b1, w2, b2, S, GPT_HIDDEN, param_dtype=jnp.bfloat16)
    out_bf16 = classifier_head_forward(
        gpt_out.astype(jnp.bfloat16), wr_bf16, bf_bf16, block_b=8, block_s=8)
    out_bf16 = jax.block_until_ready(out_bf16)
    assert np.allclose(np.asarray(out_bf16), np.asarray(ref), rtol=2e-2, atol=2e-2)

    print("KERNEL_OK")
</pallas_src>

<mosaic_0001>
module attributes {stable_mosaic.version = 11 : i64} {
  func.func @_head_kernel(%arg0: i32, %arg1: i32, %arg2: memref<8x8x128xf32, #tpu.memory_space<vmem>>, %arg3: memref<8x5x4xf32, #tpu.memory_space<vmem>>, %arg4: memref<1x4xf32, #tpu.memory_space<vmem>>, %arg5: memref<8x4xf32, #tpu.memory_space<vmem>>, %arg6: memref<8x4xf32, #tpu.memory_space<vmem>>) attributes {dimension_semantics = [#tpu.dimension_semantics<parallel>, #tpu.dimension_semantics<arbitrary>], iteration_bounds = array<i64: 1, 2>, scalar_prefetch = 0 : i64, scratch_operands = 1 : i64, tpu.core_type = #tpu.core_type<tc>, window_params = [{transform_indices = @transform_0, window_bounds = array<i64: 8, 8, 128>}, {transform_indices = @transform_1, window_bounds = array<i64: 8, 5, 4>}, {pipeline_mode = #tpu.pipeline_mode<synchronous>, transform_indices = @transform_2, window_bounds = array<i64: 1, 4>}, {transform_indices = @transform_3, window_bounds = array<i64: 8, 4>}]} {
    %c0_i32 = arith.constant 0 : i32
    %0 = arith.cmpi eq, %arg1, %c0_i32 : i32
    %1 = arith.extui %0 : i1 to i32
    %c0_i32_0 = arith.constant 0 : i32
    %2 = arith.cmpi ne, %1, %c0_i32_0 : i32
    scf.if %2 {
      %cst_23 = arith.constant 0.000000e+00 : f32
      %56 = vector.broadcast %cst_23 : f32 to vector<8x4xf32>
      %c0_24 = arith.constant 0 : index
      %c0_25 = arith.constant 0 : index
      %57 = vector.load %arg6[%c0_24, %c0_25] : memref<8x4xf32, #tpu.memory_space<vmem>>, vector<8x4xf32>
      tpu.vector_store %arg6[%c0_24, %c0_25], %56 {strides = array<i32>} : memref<8x4xf32, #tpu.memory_space<vmem>>, vector<8x4xf32>,
    } else {
    }
    %c0 = arith.constant 0 : index
    %c0_1 = arith.constant 0 : index
    %c0_2 = arith.constant 0 : index
    %3 = vector.load %arg2[%c0, %c0_1, %c0_2] : memref<8x8x128xf32, #tpu.memory_space<vmem>>, vector<8x8x128xf32>
    %4 = vector.extract_strided_slice %3 {offsets = [0, 0, 0], sizes = [8, 8, 116], strides = [1, 1, 1]} : vector<8x8x128xf32> to vector<8x8x116xf32>
    %5 = vector.extract_strided_slice %3 {offsets = [0, 0, 1], sizes = [8, 8, 116], strides = [1, 1, 1]} : vector<8x8x128xf32> to vector<8x8x116xf32>
    %6 = arith.maximumf %4, %5 : vector<8x8x116xf32>
    %7 = vector.extract_strided_slice %3 {offsets = [0, 0, 2], sizes = [8, 8, 116], strides = [1, 1, 1]} : vector<8x8x128xf32> to vector<8x8x116xf32>
    %8 = arith.maximumf %6, %7 : vector<8x8x116xf32>
    %9 = vector.extract_strided_slice %3 {offsets = [0, 0, 5], sizes = [8, 8, 116], strides = [1, 1, 1]} : vector<8x8x128xf32> to vector<8x8x116xf32>
    %10 = arith.maximumf %8, %9 : vector<8x8x116xf32>
    %11 = vector.extract_strided_slice %3 {offsets = [0, 0, 6], sizes = [8, 8, 116], strides = [1, 1, 1]} : vector<8x8x128xf32> to vector<8x8x116xf32>
    %12 = arith.maximumf %10, %11 : vector<8x8x116xf32>
    %13 = vector.extract_strided_slice %3 {offsets = [0, 0, 7], sizes = [8, 8, 116], strides = [1, 1, 1]} : vector<8x8x128xf32> to vector<8x8x116xf32>
    %14 = arith.maximumf %12, %13 : vector<8x8x116xf32>
    %15 = vector.extract_strided_slice %3 {offsets = [0, 0, 10], sizes = [8, 8, 116], strides = [1, 1, 1]} : vector<8x8x128xf32> to vector<8x8x116xf32>
    %16 = arith.maximumf %14, %15 : vector<8x8x116xf32>
    %17 = vector.extract_strided_slice %3 {offsets = [0, 0, 11], sizes = [8, 8, 116], strides = [1, 1, 1]} : vector<8x8x128xf32> to vector<8x8x116xf32>
    %18 = arith.maximumf %16, %17 : vector<8x8x116xf32>
    %19 = vector.extract_strided_slice %3 {offsets = [0, 0, 12], sizes = [8, 8, 116], strides = [1, 1, 1]} : vector<8x8x128xf32> to vector<8x8x116xf32>
    %20 = arith.maximumf %18, %19 : vector<8x8x116xf32>
    %c0_3 = arith.constant 0 : index
    %c0_4 = arith.constant 0 : index
    %21 = vector.load %arg6[%c0_3, %c0_4] : memref<8x4xf32, #tpu.memory_space<vmem>>, vector<8x4xf32>
    %22 = vector.extract_strided_slice %20 {offsets = [0, 0, 0], sizes = [8, 8, 1], strides = [1, 1, 1]} : vector<8x8x116xf32> to vector<8x8x1xf32>
    %23 = vector.shape_cast %22 : vector<8x8x1xf32> to vector<8x8xf32>
    %c0_5 = arith.constant 0 : index
    %c0_6 = arith.constant 0 : index
    %c0_7 = arith.constant 0 : index
    %24 = vector.load %arg3[%c0_5, %c0_6, %c0_7] : memref<8x5x4xf32, #tpu.memory_space<vmem>>, vector<8x1x4xf32>
    %25 = vector.shape_cast %24 : vector<8x1x4xf32> to vector<8x4xf32>
    %cst = arith.constant dense<0.000000e+00> : vector<8x4xf32>
    %26 = tpu.matmul %23, %25, %cst {dimension_numbers = #tpu.dot_dimension_numbers<[1], [0], [0], [1], [0, 0, 1, 1], [], []>} : vector<8x8xf32>, vector<8x4xf32>, vector<8x4xf32> -> vector<8x4xf32>
    %27 = arith.addf %21, %26 : vector<8x4xf32>
    %28 = vector.extract_strided_slice %20 {offsets = [0, 0, 25], sizes = [8, 8, 1], strides = [1, 1, 1]} : vector<8x8x116xf32> to vector<8x8x1xf32>
    %29 = vector.shape_cast %28 : vector<8x8x1xf32> to vector<8x8xf32>
    %c0_8 = arith.constant 0 : index
    %c1 = arith.constant 1 : index
    %c0_9 = arith.constant 0 : index
    %30 = vector.load %arg3[%c0_8, %c1, %c0_9] : memref<8x5x4xf32, #tpu.memory_space<vmem>>, vector<8x1x4xf32>
    %31 = vector.shape_cast %30 : vector<8x1x4xf32> to vector<8x4xf32>
    %cst_10 = arith.constant dense<0.000000e+00> : vector<8x4xf32>
    %32 = tpu.matmul %29, %31, %cst_10 {dimension_numbers = #tpu.dot_dimension_numbers<[1], [0], [0], [1], [0, 0, 1, 1], [], []>} : vector<8x8xf32>, vector<8x4xf32>, vector<8x4xf32> -> vector<8x4xf32>
    %33 = arith.addf %27, %32 : vector<8x4xf32>
    %34 = vector.extract_strided_slice %20 {offsets = [0, 0, 50], sizes = [8, 8, 1], strides = [1, 1, 1]} : vector<8x8x116xf32> to vector<8x8x1xf32>
    %35 = vector.shape_cast %34 : vector<8x8x1xf32> to vector<8x8xf32>
    %c0_11 = arith.constant 0 : index
    %c2 = arith.constant 2 : index
    %c0_12 = arith.constant 0 : index
    %36 = vector.load %arg3[%c0_11, %c2, %c0_12] : memref<8x5x4xf32, #tpu.memory_space<vmem>>, vector<8x1x4xf32>
    %37 = vector.shape_cast %36 : vector<8x1x4xf32> to vector<8x4xf32>
    %cst_13 = arith.constant dense<0.000000e+00> : vector<8x4xf32>
    %38 = tpu.matmul %35, %37, %cst_13 {dimension_numbers = #tpu.dot_dimension_numbers<[1], [0], [0], [1], [0, 0, 1, 1], [], []>} : vector<8x8xf32>, vector<8x4xf32>, vector<8x4xf32> -> vector<8x4xf32>
    %39 = arith.addf %33, %38 : vector<8x4xf32>
    %40 = vector.extract_strided_slice %20 {offsets = [0, 0, 75], sizes = [8, 8, 1], strides = [1, 1, 1]} : vector<8x8x116xf32> to vector<8x8x1xf32>
    %41 = vector.shape_cast %40 : vector<8x8x1xf32> to vector<8x8xf32>
    %c0_14 = arith.constant 0 : index
    %c3 = arith.constant 3 : index
    %c0_15 = arith.constant 0 : index
    %42 = vector.load %arg3[%c0_14, %c3, %c0_15] : memref<8x5x4xf32, #tpu.memory_space<vmem>>, vector<8x1x4xf32>
    %43 = vector.shape_cast %42 : vector<8x1x4xf32> to vector<8x4xf32>
    %cst_16 = arith.constant dense<0.000000e+00> : vector<8x4xf32>
    %44 = tpu.matmul %41, %43, %cst_16 {dimension_numbers = #tpu.dot_dimension_numbers<[1], [0], [0], [1], [0, 0, 1, 1], [], []>} : vector<8x8xf32>, vector<8x4xf32>, vector<8x4xf32> -> vector<8x4xf32>
    %45 = arith.addf %39, %44 : vector<8x4xf32>
    %46 = vector.extract_strided_slice %20 {offsets = [0, 0, 100], sizes = [8, 8, 1], strides = [1, 1, 1]} : vector<8x8x116xf32> to vector<8x8x1xf32>
    %47 = vector.shape_cast %46 : vector<8x8x1xf32> to vector<8x8xf32>
    %c0_17 = arith.constant 0 : index
    %c4 = arith.constant 4 : index
    %c0_18 = arith.constant 0 : index
    %48 = vector.load %arg3[%c0_17, %c4, %c0_18] : memref<8x5x4xf32, #tpu.memory_space<vmem>>, vector<8x1x4xf32>
    %49 = vector.shape_cast %48 : vector<8x1x4xf32> to vector<8x4xf32>
    %cst_19 = arith.constant dense<0.000000e+00> : vector<8x4xf32>
    %50 = tpu.matmul %47, %49, %cst_19 {dimension_numbers = #tpu.dot_dimension_numbers<[1], [0], [0], [1], [0, 0, 1, 1], [], []>} : vector<8x8xf32>, vector<8x4xf32>, vector<8x4xf32> -> vector<8x4xf32>
    %51 = arith.addf %45, %50 : vector<8x4xf32>
    %c0_20 = arith.constant 0 : index
    %c0_21 = arith.constant 0 : index
    %52 = vector.load %arg6[%c0_20, %c0_21] : memref<8x4xf32, #tpu.memory_space<vmem>>, vector<8x4xf32>
    tpu.vector_store %arg6[%c0_20, %c0_21], %51 {strides = array<i32>} : memref<8x4xf32, #tpu.memory_space<vmem>>, vector<8x4xf32>,
    %c1_i32 = arith.constant 1 : i32
    %53 = arith.cmpi eq, %arg1, %c1_i32 : i32
    %54 = arith.extui %53 : i1 to i32
    %c0_i32_22 = arith.constant 0 : i32
    %55 = arith.cmpi ne, %54, %c0_i32_22 : i32
    scf.if %55 {
      %c0_23 = arith.constant 0 : index
      %c0_24 = arith.constant 0 : index
      %56 = vector.load %arg6[%c0_23, %c0_24] : memref<8x4xf32, #tpu.memory_space<vmem>>, vector<8x4xf32>
      %c0_25 = arith.constant 0 : index
      %c0_26 = arith.constant 0 : index
      %57 = vector.load %arg4[%c0_25, %c0_26] : memref<1x4xf32, #tpu.memory_space<vmem>>, vector<1x4xf32>
      %58 = vector.broadcast %57 : vector<1x4xf32> to vector<8x4xf32>
      %59 = arith.addf %56, %58 : vector<8x4xf32>
      %c0_27 = arith.constant 0 : index
      %c0_28 = arith.constant 0 : index
      %60 = vector.load %arg5[%c0_27, %c0_28] : memref<8x4xf32, #tpu.memory_space<vmem>>, vector<8x4xf32>
      tpu.vector_store %arg5[%c0_27, %c0_28], %59 {strides = array<i32>} : memref<8x4xf32, #tpu.memory_space<vmem>>, vector<8x4xf32>,
    } else {
    }
    return
  }
  func.func @transform_0(%arg0: i32, %arg1: i32) -> (i32, i32, i32) {
    %c0_i32 = arith.constant 0 : i32
    %c0_i32_0 = arith.constant 0 : i32
    return %arg0, %arg1, %c0_i32 : i32, i32, i32
  }
  func.func @transform_1(%arg0: i32, %arg1: i32) -> (i32, i32, i32) {
    %c0_i32 = arith.constant 0 : i32
    %c0_i32_0 = arith.constant 0 : i32
    %c0_i32_1 = arith.constant 0 : i32
    return %arg1, %c0_i32, %c0_i32_0 : i32, i32, i32
  }
  func.func @transform_2(%arg0: i32, %arg1: i32) -> (i32, i32) {
    %c0_i32 = arith.constant 0 : i32
    %c0_i32_0 = arith.constant 0 : i32
    %c0_i32_1 = arith.constant 0 : i32
    return %c0_i32, %c0_i32_0 : i32, i32
  }
  func.func @transform_3(%arg0: i32, %arg1: i32) -> (i32, i32) {
    %c0_i32 = arith.constant 0 : i32
    %c0_i32_0 = arith.constant 0 : i32
    return %arg0, %c0_i32 : i32, i32
  }
}

</mosaic_0001>

<bundles_post_ra>
// kernel: tpu_custom_call.1
= control target key start
LH: loop header
LB: loop body
LE: loop exit
PB: predicated region body
PF: predicated region fallthrough
CT: control target
= control target key end

     0   :  { %s1291_s12 = smov 0   ;;  %s1293_s13 = smov 0   ;;  %s1708_s0 = inlined_call_operand.vmem [shape: f32[8,16,128], index: 0, kind: input, shape index: {}]   ;;  %s1709_s1 = inlined_call_operand.vmem [shape: f32[16,5,4], index: 1, kind: input, shape index: {}]   ;;  %s1710_s2 = inlined_call_operand.vmem [shape: f32[1,4], index: 2, kind: input, shape index: {}]   ;;  %s1711_s3 = inlined_call_operand.vmem [shape: f32[8,4], index: 3, kind: output, shape index: {}]  }
   0x1   :  { %s1295_s14 = smov 0   ;;  %s1297_s15 = smov 0  }
   0x2   :  { %s1299_s16 = smov 0  }
   0x3 LB: > { %s22_s17 = sadd.s32 1, %s1251_s15  ;;  %p41_p1 = scmp.ne.s32.totalorder %s1243_s13, %s1239_s12  ;;  %s1255_s16 = sphi %s1299_s16, %s13_s16   ;;  %s1251_s15 = sphi %s1297_s15, %s1715_s15   ;;  %s1247_s14 = sphi %s1295_s14, %s1714_s14   ;;  %s1243_s13 = sphi %s1293_s13, %s1713_s13   ;;  %s1239_s12 = sphi %s1291_s12, %s1712_s12  }
   0x4   : > { %p23_p0 = scmp.ge.s32.totalorder %s22_s17, 2  ;;  %p42_p2 = scmp.eq.s32.totalorder %s1255_s16, 0 }
   0x5   : > { %s34_s19 = sadd.s32 1, %s1243_s13  ;;  %p1128_p5 = scmp.ge.s32.totalorder %s1255_s16, 2 }
   0x6   : > { %s1717_s17 = smov (%p23_p0, %s22_s17), 0  ;;  %p43_p3 = por %p42_p2, %p41_p1 }
   0x7   : > { %s30_s18 = ssub.s32 %s1251_s15, %s1717_s17  ;;  %143 = sbr.rel (%p1128_p5) target bundleno = 24 (0x18), region = 20 }
   0x8   : > { %p32_p4 = scmp.eq.s32.totalorder %s30_s18, 0 }
   0xa   : > { %s1326_s20 = scalar_select %p32_p4, %s1243_s13, %s34_s19  }
   0xc   : > { %146 = sbr.rel (!%p43_p3) target bundleno = 24 (0x18), region = 24  ;;  %s148_s21 = sand.u32 (%p43_p3), 1, %s1243_s13  }
   0xd   : > { %s1130_s22 = sshll.u32 (%p43_p3), %s1251_s15, 3  ;;  %s1129_s23 = sshll.u32 (%p43_p3), %s148_s21, 6 }
   0xe   : > { %s155_s26 = scalar_lea.vmem (%p43_p3), %s1708_s0, %s1130_s22  ;;  %s150_s27 = scalar_lea.vmem (%p43_p3), [#allocation3], %s1129_s23 }
   0xf   : > { %v198_v0 = vld [vmem:[%s155_s26] sm:$0xff] (%p43_p3)  ;;  %v200_v1 = vld [vmem:[%s155_s26 + $0x10] sm:$0xff] (%p43_p3) }
  0x10   : > { %v202_v2 = vld [vmem:[%s155_s26 + $0x20] sm:$0xff] (%p43_p3)  ;;  %199 = vst [vmem:[%s150_s27] sm:$0xff] (%p43_p3), %v198_v0  ;;  %v204_v3 = vld [vmem:[%s155_s26 + $0x30] sm:$0xff] (%p43_p3) }
  0x11   : > { %201 = vst [vmem:[%s150_s27 + $0x8] sm:$0xff] %v200_v1  ;;  %v206_v4 = vld [vmem:[%s155_s26 + $0x40] sm:$0xff]  ;;  %v208_v5 = vld [vmem:[%s155_s26 + $0x50] sm:$0xff] }
  0x12   : > { %203 = vst [vmem:[%s150_s27 + $0x10] sm:$0xff] %v202_v2  ;;  %v210_v6 = vld [vmem:[%s155_s26 + $0x60] sm:$0xff]  ;;  %v212_v7 = vld [vmem:[%s155_s26 + $0x70] sm:$0xff] }
  0x13   : > { %205 = vst [vmem:[%s150_s27 + $0x18] sm:$0xff] %v204_v3 }
  0x14   : > { %207 = vst [vmem:[%s150_s27 + $0x20] sm:$0xff] %v206_v4 }
  0x15   : > { %209 = vst [vmem:[%s150_s27 + $0x28] sm:$0xff] %v208_v5 }
  0x16   : > { %211 = vst [vmem:[%s150_s27 + $0x30] sm:$0xff] %v210_v6 }
  0x17   : > { %213 = vst [vmem:[%s150_s27 + $0x38] sm:$0xff] %v212_v7 }
  0x18 PF: > { %p1131_p6 = scmp.ge.s32.totalorder %s1255_s16, 1  ;;  %p227_p7 = scmp.lt.s32.totalorder %s1255_s16, 3 }
  0x1a   : > { %p228_p8 = pnand %p1131_p6, %p227_p7 }
  0x1b   : > { %s234_s28 = sand.u32 (!%p228_p8), 1, %s1239_s12   ;;  %s1133_s29 = sshll.u32 (!%p228_p8), %s1247_s14, 3 }
  0x1c   : > { %231 = sbr.rel (%p228_p8) target bundleno = 678 (0x2a6), region = 66  ;;  %s1132_s30 = sshll.u32 (!%p228_p8), %s234_s28, 6 }
  0x1d   : > { %p263_p9 = scmp.lt.s32.totalorder (!%p228_p8), %s1133_s29, 15  ;;  %s236_s8 = scalar_lea.vmem (!%p228_p8), [#allocation3], %s1132_s30 }
  0x1e   : > { %p1135_p10 = scmp.ne.s32.totalorder (!%p228_p8), %s1247_s14, 0 }
  0x21   : > { %s1719_s29 = smov (!%p263_p9, %s1133_s29), 15  ;;  %275 = sbr.rel (%p1135_p10) target bundleno = 40 (0x28), region = 74 }
  0x22   : > { %s1134_s4 = sshll.u32 %s1719_s29, 3 }
  0x23   : > { %s1341_s7 = scalar_lea.vmem %s1709_s1, %s1134_s4 }
  0x26   : > { %vm276_vm0 = vcmask 31744   ;;  %v1257_v8 = vmov 0.0  }
  0x27   : > { %277 = vst.msk [vmem:[#allocation2] sm:$0xff] %vm276_vm0, %v1257_v8 }
  0x28 PF: > { %v1344_v9 = vld [vmem:[%s236_s8 + $0x10] sm:$0xff]  ;;  %v1346_v10 = vld [vmem:[%s236_s8] sm:$0xff]  ;;  %s1258_s9 = smov 127   ;;  %v1353_v12 = vld [vmem:[%s236_s8 + $0x18] sm:$0xff]  ;;  %s1259_s10 = smov 126   ;;  %vm601_vm1 = vcmask 1041409  }
  0x29   : > { %298 = vrot.lane.b32.xlu1 %v1344_v9, %s1258_s9  ;;  %294 = vrot.lane.b32.xlu0 %v1346_v10, %s1258_s9  ;;  %v1350_v11 = vld [vmem:[%s236_s8 + $0x20] sm:$0xff]  ;;  %v1355_v13 = vld [vmem:[%s236_s8 + $0x8] sm:$0xff]  ;;  %s1260_s11 = smov 123   ;;  %s1261_s12 = smov 122   ;;  %vm603_vm2 = vcmask 1042434   ;;  %vm605_vm3 = vcmask 1043459  }
  0x2a   : > { %302 = vrot.lane.b32.xlu2 %v1350_v11, %s1258_s9  ;;  %v1357_v14 = vld [vmem:[%s236_s8 + $0x28] sm:$0xff]  ;;  %v1362_v15 = vld [vmem:[%s236_s8 + $0x38] sm:$0xff]  ;;  %v1364_v16 = vld [vmem:[%s236_s8 + $0x30] sm:$0xff]  ;;  %s1262_s18 = smov 121   ;;  %s1263_s19 = smov 118   ;;  %vm607_vm4 = vcmask 1044484  }
  0x2b   : > { %s1264_s21 = smov 117   ;;  %s1265_s22 = smov 116   ;;  %vm609_vm5 = vcmask 1045509   ;;  %vm611_vm6 = vcmask 1046534   ;;  %vm613_vm7 = vcmask 1047559   ;;  %vm638_vm8 = vcmask 64512  }
  0x2c   : > { %vm1034_vm9 = vcmask 31744   ;;  %p1141_p11 = scmp.ne.s32.totalorder %s1247_s14, 1 }
  0x31   : > { %300 = vrot.lane.b32.xlu1 %v1353_v12, %s1258_s9  ;;  %296 = vrot.lane.b32.xlu0 %v1355_v13, %s1258_s9 }
  0x32   : > { %304 = vrot.lane.b32.xlu2 %v1357_v14, %s1258_s9 }
  0x39   : > { %308 = vrot.lane.b32.xlu1 %v1362_v15, %s1258_s9  ;;  %306 = vrot.lane.b32.xlu0 %v1364_v16, %s1258_s9 }
  0x3a   : > { %326 = vrot.lane.b32.xlu2 %v1346_v10, %s1259_s10 }
  0x41   : > { %330 = vrot.lane.b32.xlu1 %v1344_v9, %s1259_s10  ;;  %328 = vrot.lane.b32.xlu0 %v1355_v13, %s1259_s10 }
  0x42   : > { %332 = vrot.lane.b32.xlu2 %v1353_v12, %s1259_s10 }
  0x49   : > { %336 = vrot.lane.b32.xlu1 %v1357_v14, %s1259_s10  ;;  %334 = vrot.lane.b32.xlu0 %v1350_v11, %s1259_s10 }
  0x4a   : > { %338 = vrot.lane.b32.xlu2 %v1364_v16, %s1259_s10 }
  0x51   : > { %358 = vrot.lane.b32.xlu1 %v1346_v10, %s1260_s11  ;;  %340 = vrot.lane.b32.xlu0 %v1362_v15, %s1259_s10 }
  0x52   : > { %360 = vrot.lane.b32.xlu2 %v1355_v13, %s1260_s11 }
  0x59   : > { %364 = vrot.lane.b32.xlu1 %v1353_v12, %s1260_s11  ;;  %362 = vrot.lane.b32.xlu0 %v1344_v9, %s1260_s11 }
  0x5a   : > { %366 = vrot.lane.b32.xlu2 %v1350_v11, %s1260_s11 }
  0x61   : > { %370 = vrot.lane.b32.xlu1 %v1364_v16, %s1260_s11  ;;  %368 = vrot.lane.b32.xlu0 %v1357_v14, %s1260_s11 }
  0x62   : > { %372 = vrot.lane.b32.xlu2 %v1362_v15, %s1260_s11 }
  0x69   : > { %392 = vrot.lane.b32.xlu1 %v1355_v13, %s1261_s12  ;;  %390 = vrot.lane.b32.xlu0 %v1346_v10, %s1261_s12 }
  0x6a   : > { %394 = vrot.lane.b32.xlu2 %v1344_v9, %s1261_s12 }
  0x71   : > { %398 = vrot.lane.b32.xlu1 %v1350_v11, %s1261_s12  ;;  %396 = vrot.lane.b32.xlu0 %v1353_v12, %s1261_s12 }
  0x72   : > { %400 = vrot.lane.b32.xlu2 %v1357_v14, %s1261_s12 }
  0x79   : > { %404 = vrot.lane.b32.xlu1 %v1362_v15, %s1261_s12  ;;  %402 = vrot.lane.b32.xlu0 %v1364_v16, %s1261_s12 }
  0x7a   : > { %422 = vrot.lane.b32.xlu2 %v1346_v10, %s1262_s18 }
  0x81   : > { %426 = vrot.lane.b32.xlu1 %v1344_v9, %s1262_s18  ;;  %424 = vrot.lane.b32.xlu0 %v1355_v13, %s1262_s18 }
  0x82   : > { %428 = vrot.lane.b32.xlu2 %v1353_v12, %s1262_s18 }
  0x84   : > { %v303_v17 = vpop.permute.xlu2 %302 }
  0x85   : > { %v322_v43 = vmax.f32 %v1350_v11, %v303_v17 }
  0x89   : > { %432 = vrot.lane.b32.xlu1 %v1357_v14, %s1262_s18  ;;  %430 = vrot.lane.b32.xlu0 %v1350_v11, %s1262_s18 }
  0x8a   : > { %434 = vrot.lane.b32.xlu2 %v1364_v16, %s1262_s18 }
  0x8c   : > { %v305_v18 = vpop.permute.xlu2 %304 }
  0x8d   : > { %v323_v44 = vmax.f32 %v1357_v14, %v305_v18 }
  0x91   : > { %454 = vrot.lane.b32.xlu1 %v1346_v10, %s1263_s19  ;;  %436 = vrot.lane.b32.xlu0 %v1362_v15, %s1262_s18 }
  0x92   : > { %456 = vrot.lane.b32.xlu2 %v1355_v13, %s1263_s19 }
  0x94   : > { %v327_v19 = vpop.permute.xlu2 %326 }
  0x99   : > { %460 = vrot.lane.b32.xlu1 %v1353_v12, %s1263_s19  ;;  %458 = vrot.lane.b32.xlu0 %v1344_v9, %s1263_s19 }
  0x9a   : > { %462 = vrot.lane.b32.xlu2 %v1350_v11, %s1263_s19 }
  0x9b   : > { %v299_v20 = vpop.permute.xlu1 %298  ;;  %v295_v21 = vpop.permute.xlu0 %294 }
  0x9c   : > { %v318_v22 = vmax.f32 %v1346_v10, %v295_v21  ;;  %v333_v23 = vpop.permute.xlu2 %332  ;;  %v320_v36 = vmax.f32 %v1344_v9, %v299_v20 }
  0x9e   : > { %v1406_v24 = vmax.f32 %v318_v22, %v327_v19 }
  0xa1   : > { %466 = vrot.lane.b32.xlu1 %v1364_v16, %s1263_s19  ;;  %464 = vrot.lane.b32.xlu0 %v1357_v14, %s1263_s19 }
  0xa2   : > { %468 = vrot.lane.b32.xlu2 %v1362_v15, %s1263_s19 }
  0xa3   : > { %v301_v25 = vpop.permute.xlu1 %300  ;;  %v297_v26 = vpop.permute.xlu0 %296 }
  0xa4   : > { %v321_v27 = vmax.f32 %v1353_v12, %v301_v25  ;;  %v339_v28 = vpop.permute.xlu2 %338  ;;  %v319_v35 = vmax.f32 %v1355_v13, %v297_v26  ;;  %v1266_v26 = vmov 0  }
  0xa5   : > { %1199 = vset.pattern.permute.xlu1 %v1266_v26  ;;  %1201 = vset.pattern.permute.xlu0 %v1266_v26 }
  0xa6   : > { %v1412_v29 = vmax.f32 %v321_v27, %v333_v23  ;;  %1200 = vset.pattern.permute.xlu2 %v1266_v26  ;;  %v551_v26 = vld [vmem:[%s1341_s7] sm:$0x1] }
  0xa9   : > { %488 = vrot.lane.b32.xlu1 %v1355_v13, %s1264_s21  ;;  %486 = vrot.lane.b32.xlu0 %v1346_v10, %s1264_s21 }
  0xaa   : > { %490 = vrot.lane.b32.xlu2 %v1344_v9, %s1264_s21 }
  0xab   : > { %v309_v30 = vpop.permute.xlu1 %308  ;;  %v307_v31 = vpop.permute.xlu0 %306 }
  0xac   : > { %v324_v32 = vmax.f32 %v1364_v16, %v307_v31  ;;  %v361_v33 = vpop.permute.xlu2 %360  ;;  %v325_v51 = vmax.f32 %v1362_v15, %v309_v30 }
  0xae   : > { %v356_v34 = vmax.f32 %v324_v32, %v339_v28 }
  0xb1   : > { %494 = vrot.lane.b32.xlu1 %v1350_v11, %s1264_s21  ;;  %492 = vrot.lane.b32.xlu0 %v1353_v12, %s1264_s21 }
  0xb2   : > { %496 = vrot.lane.b32.xlu2 %v1357_v14, %s1264_s21 }
  0xb3   : > { %v331_v37 = vpop.permute.xlu1 %330  ;;  %v329_v38 = vpop.permute.xlu0 %328 }
  0xb4   : > { %v352_v39 = vmax.f32 %v320_v36, %v331_v37  ;;  %v351_v40 = vmax.f32 %v319_v35, %v329_v38  ;;  %v367_v41 = vpop.permute.xlu2 %366 }
  0xb6   : > { %v383_v42 = vmax.f32 %v351_v40, %v361_v33 }
  0xb9   : > { %500 = vrot.lane.b32.xlu1 %v1362_v15, %s1264_s21  ;;  %498 = vrot.lane.b32.xlu0 %v1364_v16, %s1264_s21 }
  0xba   : > { %518 = vrot.lane.b32.xlu2 %v1346_v10, %s1265_s22 }
  0xbb   : > { %v337_v45 = vpop.permute.xlu1 %336  ;;  %v335_v46 = vpop.permute.xlu0 %334 }
  0xbc   : > { %v355_v47 = vmax.f32 %v323_v44, %v337_v45  ;;  %v354_v48 = vmax.f32 %v322_v43, %v335_v46  ;;  %v373_v49 = vpop.permute.xlu2 %372 }
  0xbe   : > { %v386_v50 = vmax.f32 %v354_v48, %v367_v41 }
  0xc1   : > { %522 = vrot.lane.b32.xlu1 %v1344_v9, %s1265_s22  ;;  %520 = vrot.lane.b32.xlu0 %v1355_v13, %s1265_s22 }
  0xc2   : > { %524 = vrot.lane.b32.xlu2 %v1353_v12, %s1265_s22 }
  0xc3   : > { %v359_v52 = vpop.permute.xlu1 %358  ;;  %v341_v53 = vpop.permute.xlu0 %340 }
  0xc4   : > { %v382_v54 = vmax.f32 %v1406_v24, %v359_v52  ;;  %v357_v55 = vmax.f32 %v325_v51, %v341_v53  ;;  %v395_v56 = vpop.permute.xlu2 %394 }
  0xc6   : > { %v389_v57 = vmax.f32 %v357_v55, %v373_v49 }
  0xc9   : > { %528 = vrot.lane.b32.xlu1 %v1357_v14, %s1265_s22  ;;  %526 = vrot.lane.b32.xlu0 %v1350_v11, %s1265_s22 }
  0xca   : > { %530 = vrot.lane.b32.xlu2 %v1364_v16, %s1265_s22 }
  0xcb   : > { %v365_v58 = vpop.permute.xlu1 %364  ;;  %v363_v59 = vpop.permute.xlu0 %362 }
  0xcc   : > { %v385_v60 = vmax.f32 %v1412_v29, %v365_v58  ;;  %v384_v61 = vmax.f32 %v352_v39, %v363_v59  ;;  %v401_v62 = vpop.permute.xlu2 %400 }
  0xce   : > { %v1437_v63 = vmax.f32 %v384_v61, %v395_v56 }
  0xd1   : > { %532 = vrot.lane.b32.xlu0 %v1362_v15, %s1265_s22 }
  0xd3   : > { %v371_v0 = vpop.permute.xlu1 %370  ;;  %v369_v1 = vpop.permute.xlu0 %368 }
  0xd4   : > { %v388_v2 = vmax.f32 %v356_v34, %v371_v0  ;;  %v387_v3 = vmax.f32 %v355_v47, %v369_v1  ;;  %v423_v4 = vpop.permute.xlu2 %422 }
  0xd6   : > { %v1440_v5 = vmax.f32 %v387_v3, %v401_v62 }
  0xdb   : > { %v393_v6 = vpop.permute.xlu1 %392  ;;  %v391_v7 = vpop.permute.xlu0 %390 }
  0xdc   : > { %v415_v8 = vmax.f32 %v383_v42, %v393_v6  ;;  %v429_v9 = vpop.permute.xlu2 %428  ;;  %v414_v35 = vmax.f32 %v382_v54, %v391_v7 }
  0xde   : > { %v446_v36 = vmax.f32 %v414_v35, %v423_v4 }
  0xe3   : > { %v399_v10 = vpop.permute.xlu1 %398  ;;  %v397_v11 = vpop.permute.xlu0 %396 }
  0xe4   : > { %v418_v12 = vmax.f32 %v386_v50, %v399_v10  ;;  %v1442_v13 = vpop.permute.xlu2 %434  ;;  %v417_v41 = vmax.f32 %v385_v60, %v397_v11 }
  0xe6   : > { %v449_v44 = vmax.f32 %v417_v41, %v429_v9 }
  0xeb   : > { %v405_v14 = vpop.permute.xlu1 %404  ;;  %v403_v16 = vpop.permute.xlu0 %402 }
  0xec   : > { %v1444_v17 = vmax.f32 %v389_v57, %v405_v14  ;;  %v1446_v15 = vmax.f32 %v388_v2, %v403_v16  ;;  %v457_v18 = vpop.permute.xlu2 %456 }
  0xee   : > { %v452_v19 = vmax.f32 %v1446_v15, %v1442_v13 }
  0xf3   : > { %v427_v20 = vpop.permute.xlu1 %426  ;;  %v425_v21 = vpop.permute.xlu0 %424 }
  0xf4   : > { %v463_v22 = vpop.permute.xlu2 %462  ;;  %v448_v53 = vmax.f32 %v1437_v63, %v427_v20  ;;  %v447_v54 = vmax.f32 %v415_v8, %v425_v21  ;;  %v1267_v20 = vmov 25   ;;  %v1270_v21 = vmov 100  }
  0xf6   : > { %v479_v56 = vmax.f32 %v447_v54, %v457_v18 }
  0xfb   : > { %v433_v23 = vpop.permute.xlu1 %432  ;;  %v431_v24 = vpop.permute.xlu0 %430 }
  0xfc   : > { %v469_v25 = vpop.permute.xlu2 %468  ;;  %v451_v61 = vmax.f32 %v1440_v5, %v433_v23  ;;  %v450_v62 = vmax.f32 %v418_v12, %v431_v24  ;;  %v552_v23 = vld [vmem:[%s1341_s7 + $0x8] sm:$0x1]  ;;  %v553_v24 = vld [vmem:[%s1341_s7 + $0x10] sm:$0x1] }
  0xfe   : > { %v482_v63 = vmax.f32 %v450_v62, %v463_v22 }
 0x103   : > { %v455_v27 = vpop.permute.xlu1 %454  ;;  %v437_v28 = vpop.permute.xlu0 %436 }
 0x104   : > { %v491_v29 = vpop.permute.xlu2 %490  ;;  %v478_v38 = vmax.f32 %v446_v36, %v455_v27  ;;  %v453_v8 = vmax.f32 %v1444_v17, %v437_v28  ;;  %v1268_v17 = vmov 50   ;;  %v554_v27 = vld [vmem:[%s1341_s7 + $0x18] sm:$0x1]  ;;  %v625_v28 = vrot.slane %v553_v24, 6  ;;  %v557_v36 = vld [vmem:[%s1341_s7 + $0x30] sm:$0x1] }
 0x105   : > { %v633_v41 = vrot.slane %v557_v36, 2 }
 0x106   : > { %v485_v11 = vmax.f32 %v453_v8, %v469_v25  ;;  %v623_v25 = vrot.slane %v552_v23, 7 }
 0x10b   : > { %v461_v30 = vpop.permute.xlu1 %460  ;;  %v459_v31 = vpop.permute.xlu0 %458 }
 0x10c   : > { %v497_v32 = vpop.permute.xlu2 %496  ;;  %v481_v45 = vmax.f32 %v449_v44, %v461_v30  ;;  %v480_v55 = vmax.f32 %v448_v53, %v459_v31  ;;  %v624_v30 = vsel %vm601_vm1, %v623_v25, %v551_v26  ;;  %v627_v31 = vrot.slane %v554_v27, 5  ;;  %v762_v25 = vld [vmem:[%s1341_s7 + $0x3a] sm:$0x1] }
 0x10e   : > { %v512_v57 = vmax.f32 %v480_v55, %v491_v29  ;;  %v555_v29 = vld [vmem:[%s1341_s7 + $0x20] sm:$0x1] }
 0x113   : > { %v467_v33 = vpop.permute.xlu1 %466  ;;  %v465_v34 = vpop.permute.xlu0 %464 }
 0x114   : > { %v519_v37 = vpop.permute.xlu2 %518  ;;  %v483_v2 = vmax.f32 %v451_v61, %v465_v34  ;;  %v484_v5 = vmax.f32 %v452_v19, %v467_v33  ;;  %v1269_v19 = vmov 75   ;;  %v626_v33 = vsel %vm603_vm2, %v625_v28, %v624_v30 }
 0x115   : > { %v629_v34 = vrot.slane %v555_v29, 4  ;;  %v822_v30 = vrot.slane %v762_v25, 1 }
 0x116   : > { %v515_v3 = vmax.f32 %v483_v2, %v497_v32  ;;  %v556_v32 = vld [vmem:[%s1341_s7 + $0x28] sm:$0x1] }
 0x11b   : > { %v489_v39 = vpop.permute.xlu1 %488  ;;  %v487_v40 = vpop.permute.xlu0 %486 }
 0x11c   : > { %v510_v42 = vmax.f32 %v478_v38, %v487_v40  ;;  %v525_v46 = vpop.permute.xlu2 %524  ;;  %v511_v58 = vmax.f32 %v479_v56, %v489_v39  ;;  %v631_v38 = vrot.slane %v556_v32, 3  ;;  %v558_v39 = vld [vmem:[%s1341_s7 + $0x38] sm:$0x1] }
 0x11e   : > { %v1450_v43 = vmax.f32 %v510_v42, %v519_v37  ;;  %v628_v37 = vsel %vm605_vm3, %v627_v31, %v626_v33 }
 0x11f   : > { %v630_v40 = vsel %vm607_vm4, %v629_v34, %v628_v37  ;;  %v849_v34 = vld [vmem:[%s1341_s7 + $0xb] sm:$0x1] }
 0x120   : > { %568 = vperm.xlu1 %1199, %v1450_v43   ;;  %v632_v42 = vsel %vm609_vm5, %v631_v38, %v630_v40  ;;  %v903_v36 = vrot.slane %v849_v34, 7  ;;  %v848_v38 = vld [vmem:[%s1341_s7 + $0x3] sm:$0x1] }
 0x121   : > { %v634_v44 = vsel %vm611_vm6, %v633_v41, %v632_v42  ;;  %v852_v41 = vld [vmem:[%s1341_s7 + $0x23] sm:$0x1] }
 0x122   : > { %v904_v42 = vsel %vm601_vm1, %v903_v36, %v848_v38 }
 0x123   : > { %v495_v47 = vpop.permute.xlu1 %494  ;;  %v493_v48 = vpop.permute.xlu0 %492 }
 0x124   : > { %v513_v49 = vmax.f32 %v481_v45, %v493_v48  ;;  %v514_v4 = vmax.f32 %v482_v63, %v495_v47  ;;  %v531_v13 = vpop.permute.xlu2 %530  ;;  %v591_v48 = vlaneseq }
 0x126   : > { %v1453_v50 = vmax.f32 %v513_v49, %v525_v46 }
 0x128   : > { %577 = vperm.xlu1 %1199, %v1453_v50  }
 0x12b   : > { %v501_v51 = vpop.permute.xlu1 %500  ;;  %v499_v52 = vpop.permute.xlu0 %498 }
 0x12c   : > { %v516_v12 = vmax.f32 %v484_v5, %v499_v52  ;;  %v517_v14 = vmax.f32 %v485_v11, %v501_v51  ;;  %v1516_v51 = vand.u32 127, %v591_v48  ;;  %v757_v5 = vld [vmem:[%s1341_s7 + $0x12] sm:$0x1]  ;;  %v854_v48 = vld [vmem:[%s1341_s7 + $0x33] sm:$0x1] }
 0x12e   : > { %v1468_v15 = vmax.f32 %v516_v12, %v531_v13  ;;  %v755_v12 = vld [vmem:[%s1341_s7 + $0x2] sm:$0x1]  ;;  %v758_v13 = vld [vmem:[%s1341_s7 + $0x1a] sm:$0x1] }
 0x133   : > { %v523_v59 = vpop.permute.xlu1 %522  ;;  %v521_v60 = vpop.permute.xlu0 %520 }
 0x134   : > { %v1458_v0 = vmax.f32 %v512_v57, %v523_v59  ;;  %v1460_v1 = vmax.f32 %v511_v58, %v521_v60 }
 0x136   : > { %574 = vperm.xlu0 %1201, %v1458_v0   ;;  %571 = vperm.xlu2 %1200, %v1460_v1  }
 0x13b   : > { %v529_v6 = vpop.permute.xlu1 %528  ;;  %v527_v7 = vpop.permute.xlu0 %526 }
 0x13c   : > { %v547_v9 = vmax.f32 %v515_v3, %v529_v6  ;;  %v1465_v10 = vmax.f32 %v514_v4, %v527_v7 }
 0x13e   : > { %583 = vperm.xlu1 %1199, %v547_v9   ;;  %580 = vperm.xlu2 %1200, %v1465_v10  }
 0x143   : > { %v533_v16 = vpop.permute.xlu0 %532 }
 0x144   : > { %v1470_v18 = vmax.f32 %v517_v14, %v533_v16  ;;  %v812_v14 = vrot.slane %v757_v5, 6  ;;  %v759_v16 = vld [vmem:[%s1341_s7 + $0x22] sm:$0x1] }
 0x146   : > { %1202 = vset.pattern.permute.xlu1 %v1267_v20  ;;  %586 = vperm.xlu2 %1200, %v1468_v15  }
 0x147   : > { %589 = vperm.xlu0 %1201, %v1470_v18   ;;  %671 = vperm.xlu1 %1202, %v1450_v43  }
 0x14e   : > { %1203 = vset.pattern.permute.xlu2 %v1268_v17 }
 0x14f   : > { %1204 = vset.pattern.permute.xlu0 %v1268_v17  ;;  %1205 = vset.pattern.permute.xlu1 %v1268_v17 }
 0x150   : > { %764 = vperm.xlu2 %1203, %v1450_v43   ;;  %767 = vperm.xlu0 %1204, %v1460_v1  }
 0x151   : > { %770 = vperm.xlu1 %1205, %v1458_v0  }
 0x158   : > { %773 = vperm.xlu2 %1203, %v1453_v50   ;;  %776 = vperm.xlu0 %1204, %v1465_v10  }
 0x159   : > { %1206 = vset.pattern.permute.xlu1 %v1269_v19 }
 0x15a   : > { %857 = vperm.xlu1 %1206, %v1450_v43  }
 0x160   : > { %1207 = vset.pattern.permute.xlu2 %v1269_v19  ;;  %779 = vperm.xlu0 %1204, %v547_v9  }
 0x161   : > { %860 = vperm.xlu2 %1207, %v1460_v1  }
 0x162   : > { %863 = vperm.xlu1 %1206, %v1458_v0  }
 0x168   : > { %782 = vperm.xlu0 %1204, %v1468_v15  }
 0x169   : > { %1208 = vset.pattern.permute.xlu2 %v1267_v20 }
 0x16a   : > { %866 = vperm.xlu1 %1206, %v1453_v50   ;;  %674 = vperm.xlu2 %1208, %v1460_v1  }
 0x170   : > { %785 = vperm.xlu0 %1204, %v1470_v18  }
 0x172   : > { %869 = vperm.xlu1 %1206, %v1465_v10   ;;  %677 = vperm.xlu2 %1208, %v1458_v0  }
 0x178   : > { %1209 = vset.pattern.permute.xlu0 %v1269_v19 }
 0x179   : > { %875 = vperm.xlu0 %1209, %v1468_v15  }
 0x17a   : > { %872 = vperm.xlu1 %1206, %v547_v9   ;;  %680 = vperm.xlu2 %1208, %v1453_v50  }
 0x181   : > { %1213 = vset.pattern.permute.xlu0 %v1270_v21 }
 0x182   : > { %1210 = vset.pattern.permute.xlu1 %v1267_v20  ;;  %683 = vperm.xlu2 %1208, %v1465_v10  }
 0x183   : > { %950 = vperm.xlu0 %1213, %v1450_v43   ;;  %686 = vperm.xlu1 %1210, %v547_v9   ;;  %v635_v43 = vrot.slane %v558_v39, 1  ;;  %v851_v39 = vld [vmem:[%s1341_s7 + $0x1b] sm:$0x1] }
 0x185   : > { %v636_v45 = vsel %vm613_vm7, %v635_v43, %v634_v44  ;;  %v907_v43 = vrot.slane %v851_v39, 5 }
 0x186   : > { %656 = vmatpush.msra.mxu0 %v636_v45  ;;  %v853_v45 = vld [vmem:[%s1341_s7 + $0x2b] sm:$0x1] }
 0x18a   : > { %1211 = vset.pattern.permute.xlu2 %v1269_v19  ;;  %v816_v19 = vrot.slane %v759_v16, 4 }
 0x18b   : > { %965 = vperm.xlu0 %1213, %v547_v9   ;;  %689 = vperm.xlu1 %1210, %v1468_v15  }
 0x18c   : > { %878 = vperm.xlu2 %1211, %v1470_v18  }
 0x190   : > { %v572_v22 = vpop.permute.xlu2 %571 }
 0x191   : > { %v594_v55 = vperm.slane %v572_v22, %v1516_v51 }
 0x192   : > { %v569_v46 = vpop.permute.xlu1 %568 }
 0x193   : > { %1214 = vset.pattern.permute.xlu1 %v1270_v21 }
 0x194   : > { %1212 = vset.pattern.permute.xlu2 %v1267_v20  ;;  %953 = vperm.xlu1 %1214, %v1460_v1   ;;  %v760_v20 = vld [vmem:[%s1341_s7 + $0x2a] sm:$0x1] }
 0x195   : > { %692 = vperm.xlu2 %1212, %v1470_v18   ;;  %v818_v23 = vrot.slane %v760_v20, 3 }
 0x198   : > { %v581_v35 = vpop.permute.xlu2 %580 }
 0x19a   : > { %v578_v49 = vpop.permute.xlu1 %577 }
 0x19b   : > { %v596_v59 = vperm.slane %v578_v49, %v1516_v51 }
 0x19c   : > { %959 = vperm.xlu1 %1214, %v1453_v50   ;;  %v593_v50 = vperm.slane %v569_v46, %v1516_v51 }
 0x19d   : > { %1215 = vset.pattern.permute.xlu2 %v1270_v21  ;;  %v761_v21 = vld [vmem:[%s1341_s7 + $0x32] sm:$0x1] }
 0x19e   : > { %956 = vperm.xlu2 %1215, %v1458_v0   ;;  %v602_v56 = vsel %vm601_vm1, %v594_v55, %v593_v50  ;;  %v597_v0 = vperm.slane %v581_v35, %v1516_v51  ;;  %v820_v27 = vrot.slane %v761_v21, 2  ;;  %v850_v35 = vld [vmem:[%s1341_s7 + $0x13] sm:$0x1]  ;;  %v855_v50 = vld [vmem:[%s1341_s7 + $0x3b] sm:$0x1]  ;;  %v911_v55 = vrot.slane %v853_v45, 3 }
 0x19f   : > { %v905_v40 = vrot.slane %v850_v35, 6  ;;  %v668_v21 = vld [vmem:[%s1341_s7 + $0x31] sm:$0x1] }
 0x1a0   : > { %v587_v47 = vpop.permute.xlu2 %586 }
 0x1a1   : > { %v599_v63 = vperm.slane %v587_v47, %v1516_v51  ;;  %v906_v46 = vsel %vm603_vm2, %v905_v40, %v904_v42  ;;  %v909_v47 = vrot.slane %v852_v41, 4 }
 0x1a2   : > { %v908_v49 = vsel %vm605_vm3, %v907_v43, %v906_v46 }
 0x1a4   : > { %968 = vperm.xlu1 %1214, %v1468_v15  }
 0x1a6   : > { %962 = vperm.xlu2 %1215, %v1465_v10   ;;  %v756_v10 = vld [vmem:[%s1341_s7 + $0xa] sm:$0x1] }
 0x1a7   : > { %v810_v11 = vrot.slane %v756_v10, 7 }
 0x1a8   : > { %v575_v52 = vpop.permute.xlu0 %574 }
 0x1a9   : > { %v595_v54 = vperm.slane %v575_v52, %v1516_v51  ;;  %v811_v15 = vsel %vm601_vm1, %v810_v11, %v755_v12  ;;  %v662_v11 = vld [vmem:[%s1341_s7 + $0x1] sm:$0x1]  ;;  %v665_v12 = vld [vmem:[%s1341_s7 + $0x19] sm:$0x1] }
 0x1aa   : > { %v1518_v53 = vpop.permute.xlu2 %764  ;;  %v813_v17 = vsel %vm603_vm2, %v812_v14, %v811_v15  ;;  %v666_v14 = vld [vmem:[%s1341_s7 + $0x21] sm:$0x1]  ;;  %v721_v15 = vrot.slane %v665_v12, 5 }
 0x1ab   : > { %v604_v58 = vsel %vm603_vm2, %v595_v54, %v602_v56  ;;  %v910_v54 = vsel %vm607_vm4, %v909_v47, %v908_v49  ;;  %v913_v56 = vrot.slane %v854_v48, 2 }
 0x1ac   : > { %v606_v61 = vsel %vm605_vm3, %v596_v59, %v604_v58  ;;  %v912_v58 = vsel %vm609_vm5, %v911_v55, %v910_v54 }
 0x1ad   : > { %v608_v1 = vsel %vm607_vm4, %v597_v0, %v606_v61  ;;  %v914_v59 = vsel %vm611_vm6, %v913_v56, %v912_v58 }
 0x1ae   : > { %971 = vperm.xlu2 %1215, %v1470_v18   ;;  %v814_v18 = vrot.slane %v758_v13, 5 }
 0x1b0   : > { %v584_v57 = vpop.permute.xlu1 %583  ;;  %v815_v22 = vsel %vm605_vm3, %v814_v18, %v813_v17  ;;  %v667_v18 = vld [vmem:[%s1341_s7 + $0x29] sm:$0x1]  ;;  %v723_v17 = vrot.slane %v666_v14, 4 }
 0x1b1   : > { %v598_v62 = vperm.slane %v584_v57, %v1516_v51  ;;  %v817_v26 = vsel %vm607_vm4, %v816_v19, %v815_v22  ;;  %v915_v57 = vrot.slane %v855_v50, 1 }
 0x1b2   : > { %v1527_v60 = vpop.permute.xlu2 %773  ;;  %v819_v29 = vsel %vm609_vm5, %v818_v23, %v817_v26  ;;  %v725_v26 = vrot.slane %v667_v18, 3 }
 0x1b3   : > { %v610_v2 = vsel %vm609_vm5, %v598_v62, %v608_v1  ;;  %v821_v32 = vsel %vm611_vm6, %v820_v27, %v819_v29  ;;  %v916_v62 = vsel %vm613_vm7, %v915_v57, %v914_v59  ;;  %v727_v27 = vrot.slane %v668_v21, 2 }
 0x1b4   : > { %v612_v8 = vsel %vm611_vm6, %v599_v63, %v610_v2  ;;  %v823_v33 = vsel %vm613_vm7, %v822_v30, %v821_v32  ;;  %935 = vmatpush.msra.mxu3 %v916_v62  ;;  %v787_v2 = vperm.slane %v1518_v53, %v1516_v51 }
 0x1b5   : > { %842 = vmatpush.msra.mxu2 %v823_v33 }
 0x1b9   : > { %v590_v3 = vpop.permute.xlu0 %589  ;;  %v1535_v4 = vpop.permute.xlu1 %671 }
 0x1ba   : > { %v600_v6 = vperm.slane %v590_v3, %v1516_v51  ;;  %v663_v3 = vld [vmem:[%s1341_s7 + $0x9] sm:$0x1] }
 0x1bb   : > { %v1538_v7 = vpop.permute.xlu2 %860 }
 0x1bc   : > { %v614_v9 = vsel %vm613_vm7, %v600_v6, %v612_v8  ;;  %v664_v8 = vld [vmem:[%s1341_s7 + $0x11] sm:$0x1]  ;;  %v881_v47 = vperm.slane %v1538_v7, %v1516_v51 }
 0x1bd   : > { %1136 = vmatmul.msk.f32.vlgmr.msra.gmra.mxu0 %vm638_vm8, %v614_v9  ;;  %v717_v9 = vrot.slane %v663_v3, 7  ;;  %v719_v13 = vrot.slane %v664_v8, 6  ;;  %v943_v3 = vld [vmem:[%s1341_s7 + $0x14] sm:$0x1]  ;;  %v941_v8 = vld [vmem:[%s1341_s7 + $0x4] sm:$0x1] }
 0x1be   : > { %v998_v12 = vrot.slane %v943_v3, 6 }
 0x1bf   : > { %v718_v16 = vsel %vm601_vm1, %v717_v9, %v662_v11  ;;  %v945_v9 = vld [vmem:[%s1341_s7 + $0x24] sm:$0x1] }
 0x1c0   : > { %v720_v20 = vsel %vm603_vm2, %v719_v13, %v718_v16  ;;  %v948_v16 = vld [vmem:[%s1341_s7 + $0x3c] sm:$0x1] }
 0x1c1   : > { %v722_v22 = vsel %vm605_vm3, %v721_v15, %v720_v20  ;;  %v1002_v15 = vrot.slane %v945_v9, 4 }
 0x1c2   : > { %v768_v24 = vpop.permute.xlu0 %767  ;;  %v724_v25 = vsel %vm607_vm4, %v723_v17, %v722_v22 }
 0x1c3   : > { %v771_v28 = vpop.permute.xlu1 %770  ;;  %v788_v1 = vperm.slane %v768_v24, %v1516_v51  ;;  %v669_v24 = vld [vmem:[%s1341_s7 + $0x39] sm:$0x1]  ;;  %v726_v33 = vsel %vm609_vm5, %v725_v26, %v724_v25  ;;  %v694_v25 = vperm.slane %v1535_v4, %v1516_v51 }
 0x1c4   : > { %v1556_v31 = vpop.permute.xlu2 %674  ;;  %v789_v6 = vperm.slane %v771_v28, %v1516_v51  ;;  %v790_v28 = vperm.slane %v1527_v60, %v1516_v51  ;;  %v729_v30 = vrot.slane %v669_v24, 1  ;;  %v728_v35 = vsel %vm611_vm6, %v727_v27, %v726_v33 }
 0x1c5   : > { %v795_v10 = vsel %vm601_vm1, %v788_v1, %v787_v2  ;;  %v942_v2 = vld [vmem:[%s1341_s7 + $0xc] sm:$0x1]  ;;  %v695_v20 = vperm.slane %v1556_v31, %v1516_v51  ;;  %v1008_v24 = vrot.slane %v948_v16, 1 }
 0x1c6   : > { %v796_v19 = vsel %vm603_vm2, %v789_v6, %v795_v10  ;;  %v730_v39 = vsel %vm613_vm7, %v729_v30, %v728_v35  ;;  %v944_v6 = vld [vmem:[%s1341_s7 + $0x1c] sm:$0x1]  ;;  %v946_v10 = vld [vmem:[%s1341_s7 + $0x2c] sm:$0x1]  ;;  %v996_v11 = vrot.slane %v942_v2, 7  ;;  %v550_v2 = vld [vmem:[#allocation2] sm:$0xff] }
 0x1c7   : > { %v797_v34 = vsel %vm605_vm3, %v790_v28, %v796_v19  ;;  %749 = vmatpush.msra.mxu1 %v730_v39  ;;  %v1000_v13 = vrot.slane %v944_v6, 5  ;;  %v1004_v18 = vrot.slane %v946_v10, 3 }
 0x1ca   : > { %v777_v37 = vpop.permute.xlu0 %776 }
 0x1cb   : > { %v791_v23 = vperm.slane %v777_v37, %v1516_v51 }
 0x1cc   : > { %v1566_v44 = vpop.permute.xlu1 %857  ;;  %v1572_v52 = vpop.permute.xlu2 %677 }
 0x1cd   : > { %v798_v36 = vsel %vm607_vm4, %v791_v23, %v797_v34  ;;  %v880_v45 = vperm.slane %v1566_v44, %v1516_v51  ;;  %v696_v22 = vperm.slane %v1572_v52, %v1516_v51 }
 0x1cf   : > { %v888_v50 = vsel %vm601_vm1, %v881_v47, %v880_v45 }
 0x1d2   : > { %v780_v61 = vpop.permute.xlu0 %779 }
 0x1d3   : > { %v792_v29 = vperm.slane %v780_v61, %v1516_v51 }
 0x1d4   : > { %v864_v0 = vpop.permute.xlu1 %863  ;;  %v1582_v63 = vpop.permute.xlu2 %680 }
 0x1d5   : > { %v799_v60 = vsel %vm609_vm5, %v792_v29, %v798_v36  ;;  %v882_v46 = vperm.slane %v864_v0, %v1516_v51  ;;  %v697_v26 = vperm.slane %v1582_v63, %v1516_v51  ;;  %v702_v29 = vsel %vm601_vm1, %v695_v20, %v694_v25 }
 0x1d7   : > { %v889_v55 = vsel %vm603_vm2, %v882_v46, %v888_v50 }
 0x1da   : > { %v783_v5 = vpop.permute.xlu0 %782 }
 0x1db   : > { %v793_v32 = vperm.slane %v783_v5, %v1516_v51  ;;  %v947_v5 = vld [vmem:[%s1341_s7 + $0x34] sm:$0x1] }
 0x1dc   : > { %v867_v53 = vpop.permute.xlu1 %866  ;;  %v1608_v37 = vpop.permute.xlu2 %683  ;;  %v1006_v21 = vrot.slane %v947_v5, 2 }
 0x1dd   : > { %v800_v42 = vsel %vm611_vm6, %v793_v32, %v799_v60  ;;  %v883_v48 = vperm.slane %v867_v53, %v1516_v51  ;;  %v997_v53 = vsel %vm601_vm1, %v996_v11, %v941_v8  ;;  %v698_v31 = vperm.slane %v1608_v37, %v1516_v51 }
 0x1de   : > { %v999_v19 = vsel %vm603_vm2, %v998_v12, %v997_v53  ;;  %v703_v32 = vsel %vm603_vm2, %v696_v22, %v702_v29 }
 0x1df   : > { %v890_v7 = vsel %vm605_vm3, %v883_v48, %v889_v55  ;;  %v1001_v23 = vsel %vm605_vm3, %v1000_v13, %v999_v19  ;;  %v704_v33 = vsel %vm605_vm3, %v697_v26, %v703_v32 }
 0x1e0   : > { %v1003_v27 = vsel %vm607_vm4, %v1002_v15, %v1001_v23  ;;  %v705_v34 = vsel %vm607_vm4, %v698_v31, %v704_v33 }
 0x1e1   : > { %v1005_v28 = vsel %vm609_vm5, %v1004_v18, %v1003_v27 }
 0x1e2   : > { %v786_v38 = vpop.permute.xlu0 %785  ;;  %v1007_v30 = vsel %vm611_vm6, %v1006_v21, %v1005_v28 }
 0x1e3   : > { %v794_v40 = vperm.slane %v786_v38, %v1516_v51  ;;  %v1009_v4 = vsel %vm613_vm7, %v1008_v24, %v1007_v30 }
 0x1e4   : > { %v870_v41 = vpop.permute.xlu1 %869  ;;  %1028 = vmatpush.msrb.mxu0 %v1009_v4 }
 0x1e5   : > { %v801_v43 = vsel %vm613_vm7, %v794_v40, %v800_v42  ;;  %v884_v49 = vperm.slane %v870_v41, %v1516_v51 }
 0x1e6   : > { %1138 = vmatmul.msk.f32.vlgmr.msra.gmra.mxu2 %vm638_vm8, %v801_v43  ;;  %v879_v44 = vpop.permute.xlu2 %878 }
 0x1e7   : > { %v891_v58 = vsel %vm607_vm4, %v884_v49, %v890_v7  ;;  %v887_v61 = vperm.slane %v879_v44, %v1516_v51 }
 0x1eb   : > { %v876_v54 = vpop.permute.xlu0 %875 }
 0x1ec   : > { %v873_v56 = vpop.permute.xlu1 %872  ;;  %v886_v59 = vperm.slane %v876_v54, %v1516_v51 }
 0x1ed   : > { %v885_v57 = vperm.slane %v873_v56, %v1516_v51 }
 0x1ef   : > { %v892_v62 = vsel %vm609_vm5, %v885_v57, %v891_v58  ;;  %v693_v17 = vpop.permute.xlu2 %692 }
 0x1f0   : > { %v893_v0 = vsel %vm611_vm6, %v886_v59, %v892_v62  ;;  %v701_v36 = vperm.slane %v693_v17, %v1516_v51 }
 0x1f1   : > { %v894_v1 = vsel %vm613_vm7, %v887_v61, %v893_v0 }
 0x1f2   : > { %1139 = vmatmul.msk.f32.vlgmr.msra.gmra.mxu3 %vm638_vm8, %v894_v1 }
 0x1f5   : > { %v687_v14 = vpop.permute.xlu1 %686  ;;  %v951_v41 = vpop.permute.xlu0 %950 }
 0x1f6   : > { %v699_v52 = vperm.slane %v687_v14, %v1516_v51  ;;  %v973_v45 = vperm.slane %v951_v41, %v1516_v51 }
 0x1f8   : > { %v706_v37 = vsel %vm609_vm5, %v699_v52, %v705_v34  ;;  %v957_v39 = vpop.permute.xlu2 %956 }
 0x1f9   : > { %v975_v48 = vperm.slane %v957_v39, %v1516_v51 }
 0x1fd   : > { %v690_v63 = vpop.permute.xlu1 %689  ;;  %v966_v55 = vpop.permute.xlu0 %965 }
 0x1fe   : > { %v700_v35 = vperm.slane %v690_v63, %v1516_v51  ;;  %v978_v57 = vperm.slane %v966_v55, %v1516_v51 }
 0x200   : > { %v707_v38 = vsel %vm611_vm6, %v700_v35, %v706_v37  ;;  %v963_v43 = vpop.permute.xlu2 %962 }
 0x201   : > { %v708_v60 = vsel %vm613_vm7, %v701_v36, %v707_v38  ;;  %v977_v44 = vperm.slane %v963_v43, %v1516_v51 }
 0x202   : > { %1137 = vmatmul.msk.f32.vlgmr.msra.gmra.mxu1 %vm638_vm8, %v708_v60 }
 0x206   : > { %v954_v40 = vpop.permute.xlu1 %953 }
 0x207   : > { %v974_v42 = vperm.slane %v954_v40, %v1516_v51 }
 0x208   : > { %v972_v56 = vpop.permute.xlu2 %971 }
 0x209   : > { %v981_v46 = vsel %vm601_vm1, %v974_v42, %v973_v45  ;;  %v980_v61 = vperm.slane %v972_v56, %v1516_v51 }
 0x20a   : > { %v982_v50 = vsel %vm603_vm2, %v975_v48, %v981_v46 }
 0x20e   : > { %v960_v47 = vpop.permute.xlu1 %959 }
 0x20f   : > { %v976_v49 = vperm.slane %v960_v47, %v1516_v51 }
 0x211   : > { %v983_v54 = vsel %vm605_vm3, %v976_v49, %v982_v50 }
 0x212   : > { %v984_v7 = vsel %vm607_vm4, %v977_v44, %v983_v54 }
 0x213   : > { %v985_v62 = vsel %vm609_vm5, %v978_v57, %v984_v7 }
 0x216   : > { %v969_v58 = vpop.permute.xlu1 %968 }
 0x217   : > { %v979_v59 = vperm.slane %v969_v58, %v1516_v51 }
 0x219   : > { %v986_v0 = vsel %vm611_vm6, %v979_v59, %v985_v62 }
 0x21a   : > { %v987_v1 = vsel %vm613_vm7, %v980_v61, %v986_v0 }
 0x21b   : > { %1140 = vmatmul.msk.f32.vlgmr.msrb.gmra.mxu0 %vm638_vm8, %v987_v1 }
 0x23a   : > { %v658_v3 = vpop.f32.mrf.mxu0 }
 0x23b   : > { %v661_v8 = vadd.f32 %v658_v3, %v550_v2 }
 0x269   : > { %v844_v10 = vpop.f32.mrf.mxu2 }
 0x275   : > { %v937_v11 = vpop.f32.mrf.mxu3 }
 0x27f   : > { %v751_v6 = vpop.f32.mrf.mxu1 }
 0x280   : > { %v754_v9 = vadd.f32 %v751_v6, %v661_v8 }
 0x282   : > { %v847_v5 = vadd.f32 %v844_v10, %v754_v9 }
 0x284   : > { %v940_v12 = vadd.f32 %v937_v11, %v847_v5 }
 0x297   : > { %1039 = sbr.rel (%p1141_p11) target bundleno = 678 (0x2a6), region = 78 }
 0x298   : > { %v1030_v13 = vpop.f32.mrf.mxu0 }
 0x299   : > { %v1033_v51 = vadd.f32 %v1030_v13, %v940_v12 }
 0x29b   : > { %1035 = vst.msk [vmem:[#allocation2] sm:$0xff] %vm1034_vm9, %v1033_v51 }
 0x29c   : > { %v1216_v16 = vld [vmem:[%s1710_s2] ss:$0 sm:$0xff] }
 0x2a2   : > { %v1040_v14 = vld [vmem:[#allocation2] sm:$0xff] }
 0x2a3   : > { %v1045_v15 = vadd.f32 %v1216_v16, %v1040_v14 }
 0x2a5   : > { %1046 = vst.msk [vmem:[%s1711_s3] sm:$0xff] %vm1034_vm9, %v1045_v15 }
 0x2a6 PF: > { %s13_s16 = sadd.s32 1, %s1255_s16   ;;  %s1712_s12 = smov %s1243_s13 }
 0x2a7   : > { %p10_p12 = scmp.ge.s32.totalorder %s13_s16, 4   ;;  %s1713_s13 = smov %s1326_s20 }
 0x2a8   : > { %s1714_s14 = smov %s1251_s15  ;;  %s1715_s15 = smov %s1717_s17 }
 0x2a9   :  { %12 = sbr.rel (!%p10_p12) target bundleno = 3 (0x3), region = 116 }

</bundles_post_ra>
